<compile_context>
chip_gen: v7x
topology: tpu7x:2x2x1
jax: 0.10.0
libtpu: 0.0.40
codegen_flags: <defaults>
</compile_context>

<pallas_src>
import jax
import jax.numpy as jnp
from jax.experimental import pallas as pl
from jax.experimental.pallas import tpu as pltpu


def _embed_kernel(patches_ref, w_ref, posb_ref, out_ref):
    # patches_ref: (TB, TN, Kp) bf16  -- batch-subtile x N-tile of patch rows
    # w_ref:       (Kp, D)      bf16  -- flattened conv weight (K zero-padded)
    # posb_ref:    (TN, D)      f32   -- position embedding + conv bias (folded)
    # out_ref:     (TB, TN, D)
    acc = jnp.einsum(
        "btk,kd->btd", patches_ref[...], w_ref[...],
        preferred_element_type=jnp.float32)            # bf16 MXU, f32 accum
    acc = acc + posb_ref[...][None, :, :]              # f32 VPU epilogue
    out_ref[...] = acc.astype(out_ref.dtype)


def _round_up(x, m):
    return ((x + m - 1) // m) * m


def siglip_vision_embeddings(pixel_values, conv_weight, conv_bias, pos_embedding,
                             patch_size, *, tile_n=512, tile_b=8,
                             out_dtype=jnp.bfloat16):
    """pixel_values:  [B, C, H, W]  (NCHW)
       conv_weight:   [D, C, P, P]  (nn.Conv2d weight)
       conv_bias:     [D]
       pos_embedding: [N, D]        (nn.Embedding weight, N = (H/P)*(W/P))
       returns:       [B, N, D]     (bf16 by default; the next layer's dtype)
    """
    B, C, H, W = pixel_values.shape
    D = conv_weight.shape[0]
    P = patch_size
    Hp, Wp = H // P, W // P
    N = Hp * Wp
    K = C * P * P
    Kp = _round_up(K, 128)

    # --- patch extraction (reshape/transpose only; requested to fuse into the
    # input DMA). Cast to bf16 BEFORE the transpose so any materialized copy
    # moves half the bytes.
    x = pixel_values.astype(jnp.bfloat16)
    x = x.reshape(B, C, Hp, P, Wp, P)
    x = jnp.transpose(x, (0, 2, 4, 1, 3, 5))
    patches = x.reshape(B, N, K)
    if Kp != K:
        patches = jnp.pad(patches, ((0, 0), (0, 0), (0, Kp - K)))

    # conv weight [D, C, P, P] -> [K, D]; pad K AFTER the transpose so the
    # patch-feature ordering (c, ph, pw) stays aligned with the patch vectors.
    w = conv_weight.reshape(D, K).T.astype(jnp.bfloat16)
    if Kp != K:
        w = jnp.pad(w, ((0, Kp - K), (0, 0)))

    # Fold conv bias into the position embedding -> single f32 epilogue add.
    pos_bias = (pos_embedding + conv_bias[None, :]).astype(jnp.float32)

    # Tiling: TN rows of the sequence dim, TB batch elements per grid step.
    TN = N if N <= tile_n else tile_n
    TB = B if B <= tile_b else tile_b
    grid = (pl.cdiv(N, TN), pl.cdiv(B, TB))   # batch innermost -> w / pos_bias
                                              # block indices constant per inner loop

    out = pl.pallas_call(
        _embed_kernel,
        out_shape=jax.ShapeDtypeStruct((B, N, D), out_dtype),
        grid_spec=pltpu.PrefetchScalarGridSpec(
            num_scalar_prefetch=0,
            grid=grid,
            in_specs=[
                pl.BlockSpec((TB, TN, Kp), lambda n, b: (b, n, 0)),
                pl.BlockSpec((Kp, D), lambda n, b: (0, 0)),      # resident
                pl.BlockSpec((TN, D), lambda n, b: (n, 0)),      # constant over b
            ],
            out_specs=pl.BlockSpec((TB, TN, D), lambda n, b: (b, n, 0)),
        ),
        compiler_params=pltpu.CompilerParams(
            dimension_semantics=("parallel", "parallel"),
            vmem_limit_bytes=40 * 1024 * 1024,         # headroom under v7x 64 MiB
            allow_input_fusion=[True, False, False],   # fuse patch extraction
        ),
    )(patches, w, pos_bias)
    return out


def _reference(pixel_values, conv_weight, conv_bias, pos_embedding, patch_size):
    # pure-JAX f32 reference: strided conv == patch matmul
    B, C, H, W = pixel_values.shape
    D = conv_weight.shape[0]
    P = patch_size
    Hp, Wp = H // P, W // P
    N = Hp * Wp
    x = pixel_values.reshape(B, C, Hp, P, Wp, P)
    x = jnp.transpose(x, (0, 2, 4, 1, 3, 5)).reshape(B, N, C * P * P)
    y = jnp.einsum("bnk,dk->bnd", x, conv_weight.reshape(D, -1)) + conv_bias
    return y + pos_embedding[None, :, :]


if __name__ == "__main__":
    # small config consistent with SiglipVisionConfig:
    #   num_channels=3, image_size=16, patch_size=4, hidden_size=32
    B, C, IMG, P, D = 2, 3, 16, 4, 32
    N = (IMG // P) ** 2

    key = jax.random.PRNGKey(0)
    k_px, k_w, k_b, k_pos = jax.random.split(key, 4)

    pixel_values = jax.random.normal(k_px, (B, C, IMG, IMG), dtype=jnp.float32)
    conv_weight = 0.05 * jax.random.normal(k_w, (D, C, P, P), dtype=jnp.float32)
    conv_bias = 0.01 * jax.random.normal(k_b, (D,), dtype=jnp.float32)
    pos_embedding = 0.02 * jax.random.normal(k_pos, (N, D), dtype=jnp.float32)

    out = siglip_vision_embeddings(pixel_values, conv_weight, conv_bias,
                                   pos_embedding, P)
    out = jax.block_until_ready(out)

    ref = _reference(pixel_values, conv_weight, conv_bias, pos_embedding, P)
    assert out.shape == (B, N, D)
    # bf16 MXU operands + bf16 output -> loosened tolerance vs the f32 reference.
    assert jnp.allclose(out.astype(jnp.float32), ref, atol=3e-2, rtol=3e-2)

    print("KERNEL_OK")
</pallas_src>

<mosaic_0001>
module attributes {stable_mosaic.version = 11 : i64} {
  func.func @_embed_kernel(%arg0: i32, %arg1: i32, %arg2: memref<2x16x128xbf16, #tpu.memory_space<vmem>>, %arg3: memref<128x32xbf16, #tpu.memory_space<vmem>>, %arg4: memref<16x32xf32, #tpu.memory_space<vmem>>, %arg5: memref<2x16x32xbf16, #tpu.memory_space<vmem>>) attributes {dimension_semantics = [#tpu.dimension_semantics<parallel>, #tpu.dimension_semantics<parallel>], iteration_bounds = array<i64: 1, 1>, scalar_prefetch = 0 : i64, scratch_operands = 0 : i64, tpu.core_type = #tpu.core_type<tc>, window_params = [{transform_indices = @transform_0, window_bounds = array<i64: 2, 16, 128>}, {pipeline_mode = #tpu.pipeline_mode<synchronous>, transform_indices = @transform_1, window_bounds = array<i64: 128, 32>}, {transform_indices = @transform_2, window_bounds = array<i64: 16, 32>}, {transform_indices = @transform_3, window_bounds = array<i64: 2, 16, 32>}]} {
    %c0 = arith.constant 0 : index
    %c0_0 = arith.constant 0 : index
    %c0_1 = arith.constant 0 : index
    %0 = vector.load %arg2[%c0, %c0_0, %c0_1] : memref<2x16x128xbf16, #tpu.memory_space<vmem>>, vector<2x16x128xbf16>
    %c0_2 = arith.constant 0 : index
    %c0_3 = arith.constant 0 : index
    %1 = vector.load %arg3[%c0_2, %c0_3] : memref<128x32xbf16, #tpu.memory_space<vmem>>, vector<128x32xbf16>
    "tpu.trace_start"() <{level = 10 : i32, message = "btk,kd->btd"}> : () -> ()
    %cst = arith.constant dense<0.000000e+00> : vector<2x16x32xf32>
    %2 = tpu.matmul %0, %1, %cst {dimension_numbers = #tpu.dot_dimension_numbers<[2], [0], [0, 1], [1], [0, 0, 0, 1, 1, 1], [], []>} : vector<2x16x128xbf16>, vector<128x32xbf16>, vector<2x16x32xf32> -> vector<2x16x32xf32>
    "tpu.trace_stop"() : () -> ()
    %c0_4 = arith.constant 0 : index
    %c0_5 = arith.constant 0 : index
    %3 = vector.load %arg4[%c0_4, %c0_5] : memref<16x32xf32, #tpu.memory_space<vmem>>, vector<16x32xf32>
    %4 = vector.shape_cast %3 : vector<16x32xf32> to vector<1x16x32xf32>
    %5 = vector.broadcast %4 : vector<1x16x32xf32> to vector<2x16x32xf32>
    %6 = arith.addf %2, %5 : vector<2x16x32xf32>
    %7 = arith.truncf %6 : vector<2x16x32xf32> to vector<2x16x32xbf16>
    %c0_6 = arith.constant 0 : index
    %c0_7 = arith.constant 0 : index
    %c0_8 = arith.constant 0 : index
    %8 = vector.load %arg5[%c0_6, %c0_7, %c0_8] : memref<2x16x32xbf16, #tpu.memory_space<vmem>>, vector<2x16x32xbf16>
    tpu.vector_store %arg5[%c0_6, %c0_7, %c0_8], %7 {strides = array<i32>} : memref<2x16x32xbf16, #tpu.memory_space<vmem>>, vector<2x16x32xbf16>,
    return
  }
  func.func @transform_0(%arg0: i32, %arg1: i32) -> (i32, i32, i32) {
    %c0_i32 = arith.constant 0 : i32
    %c0_i32_0 = arith.constant 0 : i32
    return %arg1, %arg0, %c0_i32 : i32, i32, i32
  }
  func.func @transform_1(%arg0: i32, %arg1: i32) -> (i32, i32) {
    %c0_i32 = arith.constant 0 : i32
    %c0_i32_0 = arith.constant 0 : i32
    %c0_i32_1 = arith.constant 0 : i32
    return %c0_i32, %c0_i32_0 : i32, i32
  }
  func.func @transform_2(%arg0: i32, %arg1: i32) -> (i32, i32) {
    %c0_i32 = arith.constant 0 : i32
    %c0_i32_0 = arith.constant 0 : i32
    return %arg0, %c0_i32 : i32, i32
  }
  func.func @transform_3(%arg0: i32, %arg1: i32) -> (i32, i32, i32) {
    %c0_i32 = arith.constant 0 : i32
    %c0_i32_0 = arith.constant 0 : i32
    return %arg1, %arg0, %c0_i32 : i32, i32, i32
  }
}

</mosaic_0001>

<bundles_post_ra>
// kernel: tpu_custom_call.1
= control target key start
LH: loop header
LB: loop body
LE: loop exit
PB: predicated region body
PF: predicated region fallthrough
CT: control target
= control target key end

     0   :  { %s344_s0 = inlined_call_operand.vmem [shape: bf16[2,16,128], index: 0, kind: input, shape index: {}]   ;;  %s345_s1 = inlined_call_operand.vmem [shape: bf16[128,32], index: 1, kind: input, shape index: {}]   ;;  %s346_s2 = inlined_call_operand.vmem [shape: f32[16,32], index: 2, kind: input, shape index: {}]   ;;  %s347_s3 = inlined_call_operand.hbm [shape: bf16[2,16,32], index: 3, kind: output, shape index: {}]  }
   0x1   :  { %v235_v0 = vld [vmem:[%s345_s1] sm:$0xff]   ;;  %v236_v1 = vld [vmem:[%s345_s1 + $0x8] sm:$0xff]   ;;  %v237_v2 = vld [vmem:[%s345_s1 + $0x10] sm:$0xff]  }
   0x2   :  { %212 = vmatprep.subr.bf16.mxu0 %v235_v0  ;;  %v238_v3 = vld [vmem:[%s345_s1 + $0x18] sm:$0xff]   ;;  %v243_v4 = vld [vmem:[%s344_s0] sm:$0xff]  }
   0x3   :  { %213 = vmatpush3.bf16.msra.mxu0 %v235_v0  ;;  %228 = vmatprep.mubr.bf16.mxu0 %v243_v4 }
   0x4   :  { %214 = vmatprep.subr.bf16.mxu0 %v236_v1 }
   0x7   :  { %215 = vmatpush3.bf16.msra.mxu0 %v236_v1 }
   0x8   :  { %216 = vmatprep.subr.bf16.mxu0 %v237_v2 }
   0x9   :  { %8 = vsyncpa [#allocation3], 0  ;;  %v239_v5 = vld [vmem:[%s345_s1 + $0x20] sm:$0xff]   ;;  %v240_v6 = vld [vmem:[%s345_s1 + $0x28] sm:$0xff]   ;;  %vm163_vm0 = vcmask 257024  }
   0xa   :  { %v241_v7 = vld [vmem:[%s345_s1 + $0x30] sm:$0xff]   ;;  %v242_v8 = vld [vmem:[%s345_s1 + $0x38] sm:$0xff]   ;;  %v244_v9 = vld [vmem:[%s344_s0 + $0x8] sm:$0xff]   ;;  %s269_s1 = smov [#allocation2]  }
   0xb   :  { %217 = vmatpush3.bf16.msra.mxu0 %v237_v2  ;;  %v36_v10 = vld [vmem:[%s346_s2] sm:$0xff]  ;;  %v37_v12 = vld [vmem:[%s346_s2 + $0x8] sm:$0xff]  ;;  %s173_s9 = sshll.u32 %s269_s1, 4  ;;  %s174_s9 = int_to_ptr.vmem [resolvable:$true] %s173_s9 }
   0xc   :  { %218 = vmatprep.subr.bf16.mxu0 %v238_v3  ;;  %s245_s0 = scalar_lea.vmem %s174_s9, 256  ;;  %p250_p1 = scmp.lt.s32.totalorder %s174_s9, %s174_s9 }
   0xd   :  { %p246_p0 = scmp.ne.s32.totalorder %s174_s9, %s245_s0  ;;  %p251_p2 = scmp.lt.s32.totalorder %s245_s0, %s245_s0 }
   0xf   :  { %219 = vmatpush3.bf16.msra.mxu0 %v238_v3  ;;  %p252_p3 = por %p251_p2, %p250_p1 }
  0x10   :  { %220 = vmatprep.subr.bf16.mxu0 %v239_v5 }
  0x11   :  { %p253_p4 = pnand %p252_p3, %p246_p0 }
  0x13   :  { %221 = vmatpush3.bf16.msra.mxu0 %v239_v5 }
  0x14   :  { %222 = vmatprep.subr.bf16.mxu0 %v240_v6 }
  0x17   :  { %223 = vmatpush3.bf16.msra.mxu0 %v240_v6 }
  0x18   :  { %224 = vmatprep.subr.bf16.mxu0 %v241_v7 }
  0x1b   :  { %225 = vmatpush3.bf16.msra.mxu0 %v241_v7 }
  0x1c   :  { %226 = vmatprep.subr.bf16.mxu0 %v242_v8 }
  0x1f   :  { %227 = vmatpush3.bf16.msra.mxu0 %v242_v8 }
  0x22   :  { %229 = vmatmul.mubr.bf16.vlgmr.msra.gmra.mrb[0].mxu0 %v244_v9 }
  0xf5   :  { %v230_v11 = vpop.f32.mrb[0].mxu0 }
  0xf6   :  { %v141_v13 = vadd.f32 %v230_v11, %v36_v10  ;;  %v132_v14 = vpop.f32.mrb[1].mxu0 }
  0xf7   :  { %v133_v15 = vadd.f32 %v132_v14, %v36_v10  ;;  %v231_v16 = vpop.f32.mrb[2].mxu0 }
  0xf8   :  { %v200_v17 = vpack.c.bf16 %v141_v13, %v141_v13  ;;  %v144_v18 = vadd.f32 %v231_v16, %v37_v12  ;;  %v135_v19 = vpop.f32.mrb[3].mxu0 }
  0xf9   :  { %v198_v20 = vpack.c.bf16 %v133_v15, %v133_v15  ;;  %v136_v21 = vadd.f32 %v135_v19, %v37_v12 }
  0xfa   :  { %166 = vst.msk [vmem:[#allocation2 + $0x8] sm:$0xf] %vm163_vm0, %v200_v17  ;;  %v201_v22 = vpack.c.bf16 %v144_v18, %v144_v18 }
  0xfb   :  { %164 = vst.msk [vmem:[#allocation2] sm:$0xf] %vm163_vm0, %v198_v20  ;;  %v199_v23 = vpack.c.bf16 %v136_v21, %v136_v21 }
  0xfc   :  { %167 = vst.msk [vmem:[#allocation2 + $0xc] sm:$0xf] %vm163_vm0, %v201_v22 }
  0xfd   :  { %165 = vst.msk [vmem:[#allocation2 + $0x4] sm:$0xf] %vm163_vm0, %v199_v23 }
  0xfe   :  { %256 = shalt.err (!%p253_p4)
}
  0xff   :  { %s257_s11 = scalar_lea.hbm %s347_s3, 256 }
 0x100   :  { %p258_p5 = scmp.ne.s32.totalorder %s347_s3, %s257_s11  ;;  %p261_p6 = scmp.lt.u32.totalorder %s257_s11, %s347_s3 }
 0x102   :  { %p263_p7 = pnand %p261_p6, %p258_p5 }
 0x104   :  { %266 = shalt.err (!%p263_p7)
}
 0x105   :  { %s270_s16 = smov 64   ;;  %s271_s17 = smov 4  }
 0x106   :  { %179 = dma.vmem_to_hbm [thread:$0]  %s174_s9, 256, %s347_s3, [#allocation3], %s270_s16, %s270_s16, %s271_s17  }
 0x107   :  { %267 = dma.done.wait [#allocation3], 256  }
 0x108   :  { %268 = vsyncadd [#allocation3], 4294967040 }
 0x109   :  { %183 = vsyncpa [#allocation3], 1 }

</bundles_post_ra>
